<compile_context>
chip_gen: v7x
topology: tpu7x:2x2x1
jax: 0.10.0
libtpu: 0.0.40
codegen_flags: <defaults>
</compile_context>

<pallas_src>
import functools

import jax
import jax.numpy as jnp
from jax.experimental import pallas as pl
from jax.experimental.pallas import tpu as pltpu


def _round_up(x, m):
    return (x + m - 1) // m * m


def _fused_fc_kernel(x_ref, w_ref, vec_ref, o_ref, *, layer_dims):
    """x_ref: (tm, C) compute dtype; w_ref: (L, c_pad, c_pad) compute dtype;
    vec_ref: (L+2, c_pad) f32 (rows 0..L-1 folded biases, rows L/L+1 last-layer
    BN scale/shift); o_ref: (tm, cout_pad) f32.

    Whole layer stack fused; intermediates never leave vregs/VMEM.  layer_dims
    is a static tuple of (K_l, N_l): K_0 = real input channels, K_l = padded
    width of the previous activation, N_l = round_up(cout_l, 128).
    """
    n_layers = len(layer_dims)
    c_pad = w_ref.shape[1]
    cout_pad = layer_dims[-1][1]
    compute_dtype = w_ref.dtype

    h = x_ref[...]                                      # (tm, C)
    for l, (k_l, n_l) in enumerate(layer_dims):         # static unroll; L is tiny
        w_full = w_ref[l]                               # (c_pad, c_pad), static idx
        w = w_full if (k_l == c_pad and n_l == c_pad) else w_full[:k_l, :n_l]
        b = vec_ref[pl.ds(l, 1), :]                     # (1, c_pad) f32 folded bias
        if n_l != c_pad:
            b = b[:, :n_l]
        # MXU matmul with f32 accumulation; bias add + ReLU in f32 (v5e-safe).
        h = jnp.dot(h, w, preferred_element_type=jnp.float32) + b
        h = jnp.maximum(h, 0.0)
        if l + 1 < n_layers:
            h = h.astype(compute_dtype)                 # feed next MXU op narrow

    # Only the LAST layer's BatchNorm is applied explicitly; hidden-layer BN was
    # folded into the next layer's weight/bias at pack time.
    scale = vec_ref[pl.ds(n_layers, 1), :]
    shift = vec_ref[pl.ds(n_layers + 1, 1), :]
    if cout_pad != c_pad:
        scale = scale[:, :cout_pad]
        shift = shift[:, :cout_pad]
    o_ref[...] = h * scale + shift                      # f32 epilogue, lane-dense


@functools.partial(jax.jit,
                   static_argnames=("layer_dims", "cout_last", "single_buffer"))
def _forward_impl(x, w_stack, vecs, *, layer_dims, cout_last, single_buffer):
    # Mirror: if len(x.shape) == 2: x = x[:, :, None, None]
    if x.ndim == 2:
        N, C = x.shape
        H = W = 1
        xm = x                                          # 2D fast path: no transpose
    else:
        N, C, H, W = x.shape
        # NCHW -> NHWC -> (M, C): channels on the lane axis so a 1x1 conv is a
        # plain (M, Cin) @ (Cin, Cout) matmul on the MXU.
        xm = jnp.transpose(x, (0, 2, 3, 1)).reshape(N * H * W, C)
    M = N * H * W
    xm = xm.astype(w_stack.dtype)                       # bf16 halves x DMA (no-op for f32)

    n_layers, c_pad, _ = w_stack.shape
    cout_pad = layer_dims[-1][1]

    # Row tile: big enough to amortize per-grid-step overhead; 16-aligned so the
    # bf16 activation tile is layout-native.  No HBM row padding -- the partial
    # final tile is clipped by Pallas.
    tm = min(512, _round_up(M, 16))
    if tm >= M and M > 256:
        # v7x megacore: make at least 2 row steps so ("parallel",) uses both TCs.
        tm = _round_up((M + 1) // 2, 16)
    grid_m = pl.cdiv(M, tm)

    # Tight scoped-VMEM estimate (no blanket fudge), capped below v7x's 64 MiB.
    n_const_buf = 1 if single_buffer else 2
    bpe = jnp.dtype(w_stack.dtype).itemsize
    est = (2 * tm * C * bpe                               # x tiles (double-buffered)
           + 2 * tm * cout_pad * 4                        # out tiles (f32)
           + n_const_buf * n_layers * c_pad * c_pad * bpe  # resident weight stack
           + n_const_buf * (n_layers + 2) * c_pad * 4      # packed bias/scale/shift
           + 2 * tm * c_pad * 4)                          # live f32 intermediate h
    vmem_limit = int(min(48 * 2**20, max(16 * 2**20, 2 * est)))

    # Grid-invariant operands: nothing to pipeline -> single buffer if supported.
    const_spec_kwargs = {}
    if single_buffer and hasattr(pl, "Buffered"):
        const_spec_kwargs = dict(pipeline_mode=pl.Buffered(1))

    out = pl.pallas_call(
        functools.partial(_fused_fc_kernel, layer_dims=layer_dims),
        out_shape=jax.ShapeDtypeStruct((M, cout_pad), jnp.float32),
        grid_spec=pltpu.PrefetchScalarGridSpec(
            num_scalar_prefetch=0,
            grid=(grid_m,),
            in_specs=[
                pl.BlockSpec((tm, C), lambda i: (i, 0)),               # x rows, real C
                pl.BlockSpec((n_layers, c_pad, c_pad), lambda i: (0, 0, 0),
                             **const_spec_kwargs),                     # weights
                pl.BlockSpec((n_layers + 2, c_pad), lambda i: (0, 0),
                             **const_spec_kwargs),                     # bias/scale/shift
            ],
            out_specs=pl.BlockSpec((tm, cout_pad), lambda i: (i, 0)),
        ),
        compiler_params=pltpu.CompilerParams(
            dimension_semantics=("parallel",),
            vmem_limit_bytes=vmem_limit,
        ),
    )(xm, w_stack, vecs)

    ym = out[:, :cout_last] if cout_last != cout_pad else out
    if x.ndim == 2:
        return ym   # (N, Cout): exactly what .squeeze(-1).squeeze(-1) yields here
    y4 = jnp.transpose(ym.reshape(N, H, W, cout_last), (0, 3, 1, 2))
    # .squeeze(-1).squeeze(-1)  (only drops size-1 dims, like torch.squeeze)
    if y4.shape[-1] == 1:
        y4 = y4[..., 0]
    if y4.shape[-1] == 1:
        y4 = y4[..., 0]
    return y4


_SINGLE_BUFFER_OK = None   # cached: does this JAX build accept pl.Buffered(1)?


def fc_controller_forward(x, packed_params):
    global _SINGLE_BUFFER_OK
    w_stack, vecs, layer_dims, cout_last = packed_params
    if _SINGLE_BUFFER_OK is None:
        try:
            out = _forward_impl(x, w_stack, vecs, layer_dims=layer_dims,
                                cout_last=cout_last, single_buffer=True)
            out = jax.block_until_ready(out)
            _SINGLE_BUFFER_OK = True
            return out
        except Exception:
            # This build rejects single-buffered BlockSpecs; fall back to the
            # default double-buffered (still correct, slightly more VMEM).
            _SINGLE_BUFFER_OK = False
    return _forward_impl(x, w_stack, vecs, layer_dims=layer_dims,
                         cout_last=cout_last, single_buffer=_SINGLE_BUFFER_OK)


def init_fc_controller_params(key, input_size, layers_sizes):
    """Raw, module-shaped parameters (what the torch module holds).

    Conv2d(in, out, k=1): weight (out, in, 1, 1), bias (out,)
    BatchNorm2d(out): gamma, beta, running_mean, running_var (eval mode).
    """
    raw = []
    cin = input_size
    for cout in layers_sizes:
        key, kw, kb, kg, kbe, km, kv = jax.random.split(key, 7)
        w = jax.random.normal(kw, (cout, cin, 1, 1), jnp.float32) * 0.1
        b = jax.random.normal(kb, (cout,), jnp.float32) * 0.1
        gamma = 1.0 + 0.1 * jax.random.normal(kg, (cout,), jnp.float32)
        beta = 0.1 * jax.random.normal(kbe, (cout,), jnp.float32)
        running_mean = 0.1 * jax.random.normal(km, (cout,), jnp.float32)
        running_var = jnp.abs(1.0 + 0.1 * jax.random.normal(kv, (cout,), jnp.float32))
        raw.append((w, b, gamma, beta, running_mean, running_var))
        cin = cout
    return raw


def pack_fc_controller_params(raw_params, input_size, eps=1e-5, lane=128,
                              compute_dtype=jnp.bfloat16):
    """Fold each hidden layer's BN into the next layer's weight/bias (exact
    affine-into-linear fold in f32), pad channel dims to lane-dense multiples of
    128, and stack into:
        w_stack    : (L, c_pad, c_pad) folded 1x1-conv weights, (Cin x Cout),
                     cast to `compute_dtype` (bf16 for v6e/v7x MXU; f32 works too)
        vecs       : (L+2, c_pad) f32: rows 0..L-1 folded biases;
                     rows L / L+1 = LAST layer's BN scale / shift
        layer_dims : static tuple of (K_l, N_l) per layer (K_0 = real input size)
        cout_last  : real output channel count
    """
    n_layers = len(raw_params)
    outs = [w.shape[0] for (w, *_rest) in raw_params]
    c_pad = _round_up(max([input_size] + outs), lane)

    w_stack = jnp.zeros((n_layers, c_pad, c_pad), jnp.float32)
    vecs = jnp.zeros((n_layers + 2, c_pad), jnp.float32)

    prev_scale = jnp.ones((input_size,), jnp.float32)
    prev_shift = jnp.zeros((input_size,), jnp.float32)
    cin = input_size
    for l, (w, b, gamma, beta, mean, var) in enumerate(raw_params):
        cout = w.shape[0]
        wm = w[:, :, 0, 0].T                        # (cin, cout)
        w_fold = prev_scale[:, None] * wm           # fold previous layer's BN scale
        b_fold = b + prev_shift @ wm                # fold previous layer's BN shift
        w_stack = w_stack.at[l, :cin, :cout].set(w_fold)
        vecs = vecs.at[l, :cout].set(b_fold)
        scale = gamma / jnp.sqrt(var + eps)
        shift = beta - mean * scale
        prev_scale, prev_shift = scale, shift
        cin = cout
    vecs = vecs.at[n_layers, :cin].set(prev_scale)      # last layer BN scale
    vecs = vecs.at[n_layers + 1, :cin].set(prev_shift)  # last layer BN shift

    w_stack = w_stack.astype(compute_dtype)

    layer_dims = []
    k = input_size
    for l in range(n_layers):
        n_l = _round_up(outs[l], lane)
        layer_dims.append((k, n_l))
        k = n_l
    return w_stack, vecs, tuple(layer_dims), cin        # cin == last cout


def _reference_forward(x, raw_params, eps=1e-5):
    # Pure-JAX f32 reference directly from the raw (unfused, unfolded) parameters.
    if x.ndim == 2:
        x4 = x[:, :, None, None]
    else:
        x4 = x
    N, C, H, W = x4.shape
    xm = jnp.transpose(x4, (0, 2, 3, 1)).reshape(N * H * W, C)
    for (w, b, gamma, beta, mean, var) in raw_params:
        y = xm @ w[:, :, 0, 0].T + b                         # 1x1 conv
        y = jnp.maximum(y, 0.0)                              # ReLU
        xm = (y - mean) / jnp.sqrt(var + eps) * gamma + beta  # BatchNorm2d (eval)
    cout = xm.shape[-1]
    y4 = jnp.transpose(xm.reshape(N, H, W, cout), (0, 3, 1, 2))
    if y4.shape[-1] == 1:
        y4 = y4[..., 0]
    if y4.shape[-1] == 1:
        y4 = y4[..., 0]
    return y4


if __name__ == "__main__":
    key = jax.random.PRNGKey(0)
    kx, kp = jax.random.split(key)

    input_size = 16
    layers_sizes = (32, 32)
    batch = 2

    x = jax.random.normal(kx, (batch, input_size), jnp.float32)
    raw_params = init_fc_controller_params(kp, input_size, layers_sizes)
    packed = pack_fc_controller_params(raw_params, input_size)  # bf16 compute

    out = fc_controller_forward(x, packed)
    out = jax.block_until_ready(out)

    ref = _reference_forward(x, raw_params)
    assert out.shape == (batch, layers_sizes[-1]), out.shape
    # bf16 MXU operands with f32 accumulation/epilogue: bf16-level tolerance.
    # (A broken BN fold / missing bias would err by >>0.03, so this still checks
    #  the fused-fold semantics against the raw-parameter reference.)
    max_err = float(jnp.max(jnp.abs(out - ref)))
    assert jnp.allclose(out, ref, atol=3e-2, rtol=3e-2), (
        f"mismatch vs reference (max abs err {max_err})")

    print("KERNEL_OK")
</pallas_src>

<mosaic_0001>
module attributes {stable_mosaic.version = 11 : i64} {
  func.func @_fused_fc_kernel(%arg0: i32, %arg1: memref<16x16xbf16, #tpu.memory_space<vmem>>, %arg2: memref<2x128x128xbf16, #tpu.memory_space<vmem>>, %arg3: memref<4x128xf32, #tpu.memory_space<vmem>>, %arg4: memref<16x128xf32, #tpu.memory_space<vmem>>) attributes {dimension_semantics = [#tpu.dimension_semantics<parallel>], iteration_bounds = array<i64: 1>, scalar_prefetch = 0 : i64, scratch_operands = 0 : i64, tpu.core_type = #tpu.core_type<tc>, window_params = [{transform_indices = @transform_0, window_bounds = array<i64: 16, 16>}, {pipeline_mode = #tpu.pipeline_mode<synchronous>, transform_indices = @transform_1, window_bounds = array<i64: 2, 128, 128>}, {pipeline_mode = #tpu.pipeline_mode<synchronous>, transform_indices = @transform_2, window_bounds = array<i64: 4, 128>}, {transform_indices = @transform_3, window_bounds = array<i64: 16, 128>}]} {
    %c0 = arith.constant 0 : index
    %c0_0 = arith.constant 0 : index
    %0 = vector.load %arg1[%c0, %c0_0] : memref<16x16xbf16, #tpu.memory_space<vmem>>, vector<16x16xbf16>
    %c0_1 = arith.constant 0 : index
    %c0_2 = arith.constant 0 : index
    %c0_3 = arith.constant 0 : index
    %1 = vector.load %arg2[%c0_1, %c0_2, %c0_3] : memref<2x128x128xbf16, #tpu.memory_space<vmem>>, vector<1x128x128xbf16>
    %2 = vector.shape_cast %1 : vector<1x128x128xbf16> to vector<128x128xbf16>
    %3 = vector.extract_strided_slice %2 {offsets = [0, 0], sizes = [16, 128], strides = [1, 1]} : vector<128x128xbf16> to vector<16x128xbf16>
    %c0_4 = arith.constant 0 : index
    %c0_5 = arith.constant 0 : index
    %4 = vector.load %arg3[%c0_4, %c0_5] : memref<4x128xf32, #tpu.memory_space<vmem>>, vector<1x128xf32>
    %cst = arith.constant dense<0.000000e+00> : vector<16x128xf32>
    %5 = tpu.matmul %0, %3, %cst {dimension_numbers = #tpu.dot_dimension_numbers<[1], [0], [0], [1], [0, 0, 1, 1], [], []>} : vector<16x16xbf16>, vector<16x128xbf16>, vector<16x128xf32> -> vector<16x128xf32>
    %6 = vector.broadcast %4 : vector<1x128xf32> to vector<16x128xf32>
    %7 = arith.addf %5, %6 : vector<16x128xf32>
    %cst_6 = arith.constant 0.000000e+00 : f32
    %8 = vector.broadcast %cst_6 : f32 to vector<16x128xf32>
    %9 = arith.maximumf %7, %8 : vector<16x128xf32>
    %10 = arith.truncf %9 : vector<16x128xf32> to vector<16x128xbf16>
    %c1 = arith.constant 1 : index
    %c0_7 = arith.constant 0 : index
    %c0_8 = arith.constant 0 : index
    %11 = vector.load %arg2[%c1, %c0_7, %c0_8] : memref<2x128x128xbf16, #tpu.memory_space<vmem>>, vector<1x128x128xbf16>
    %12 = vector.shape_cast %11 : vector<1x128x128xbf16> to vector<128x128xbf16>
    %c1_9 = arith.constant 1 : index
    %c0_10 = arith.constant 0 : index
    %13 = vector.load %arg3[%c1_9, %c0_10] : memref<4x128xf32, #tpu.memory_space<vmem>>, vector<1x128xf32>
    %cst_11 = arith.constant dense<0.000000e+00> : vector<16x128xf32>
    %14 = tpu.matmul %10, %12, %cst_11 {dimension_numbers = #tpu.dot_dimension_numbers<[1], [0], [0], [1], [0, 0, 1, 1], [], []>} : vector<16x128xbf16>, vector<128x128xbf16>, vector<16x128xf32> -> vector<16x128xf32>
    %15 = vector.broadcast %13 : vector<1x128xf32> to vector<16x128xf32>
    %16 = arith.addf %14, %15 : vector<16x128xf32>
    %cst_12 = arith.constant 0.000000e+00 : f32
    %17 = vector.broadcast %cst_12 : f32 to vector<16x128xf32>
    %18 = arith.maximumf %16, %17 : vector<16x128xf32>
    %c2 = arith.constant 2 : index
    %c0_13 = arith.constant 0 : index
    %19 = vector.load %arg3[%c2, %c0_13] : memref<4x128xf32, #tpu.memory_space<vmem>>, vector<1x128xf32>
    %c3 = arith.constant 3 : index
    %c0_14 = arith.constant 0 : index
    %20 = vector.load %arg3[%c3, %c0_14] : memref<4x128xf32, #tpu.memory_space<vmem>>, vector<1x128xf32>
    %21 = vector.broadcast %19 : vector<1x128xf32> to vector<16x128xf32>
    %22 = arith.mulf %18, %21 : vector<16x128xf32>
    %23 = vector.broadcast %20 : vector<1x128xf32> to vector<16x128xf32>
    %24 = arith.addf %22, %23 : vector<16x128xf32>
    %c0_15 = arith.constant 0 : index
    %c0_16 = arith.constant 0 : index
    %25 = vector.load %arg4[%c0_15, %c0_16] : memref<16x128xf32, #tpu.memory_space<vmem>>, vector<16x128xf32>
    tpu.vector_store %arg4[%c0_15, %c0_16], %24 {strides = array<i32>} : memref<16x128xf32, #tpu.memory_space<vmem>>, vector<16x128xf32>,
    return
  }
  func.func @transform_0(%arg0: i32) -> (i32, i32) {
    %c0_i32 = arith.constant 0 : i32
    %c0_i32_0 = arith.constant 0 : i32
    return %arg0, %c0_i32 : i32, i32
  }
  func.func @transform_1(%arg0: i32) -> (i32, i32, i32) {
    %c0_i32 = arith.constant 0 : i32
    %c0_i32_0 = arith.constant 0 : i32
    %c0_i32_1 = arith.constant 0 : i32
    %c0_i32_2 = arith.constant 0 : i32
    return %c0_i32, %c0_i32_0, %c0_i32_1 : i32, i32, i32
  }
  func.func @transform_2(%arg0: i32) -> (i32, i32) {
    %c0_i32 = arith.constant 0 : i32
    %c0_i32_0 = arith.constant 0 : i32
    %c0_i32_1 = arith.constant 0 : i32
    return %c0_i32, %c0_i32_0 : i32, i32
  }
  func.func @transform_3(%arg0: i32) -> (i32, i32) {
    %c0_i32 = arith.constant 0 : i32
    %c0_i32_0 = arith.constant 0 : i32
    return %arg0, %c0_i32 : i32, i32
  }
}

module attributes {stable_mosaic.version = 11 : i64} {
  func.func @_fused_fc_kernel(%arg0: i32, %arg1: memref<16x16xbf16, #tpu.memory_space<vmem>>, %arg2: memref<2x128x128xbf16, #tpu.memory_space<vmem>>, %arg3: memref<4x128xf32, #tpu.memory_space<vmem>>, %arg4: memref<16x128xf32, #tpu.memory_space<vmem>>) attributes {dimension_semantics = [#tpu.dimension_semantics<parallel>], iteration_bounds = array<i64: 1>, scalar_prefetch = 0 : i64, scratch_operands = 0 : i64, tpu.core_type = #tpu.core_type<tc>, window_params = [{transform_indices = @transform_0, window_bounds = array<i64: 16, 16>}, {pipeline_mode = #tpu.pipeline_mode<synchronous>, transform_indices = @transform_1, window_bounds = array<i64: 2, 128, 128>}, {pipeline_mode = #tpu.pipeline_mode<synchronous>, transform_indices = @transform_2, window_bounds = array<i64: 4, 128>}, {transform_indices = @transform_3, window_bounds = array<i64: 16, 128>}]} {
    %c0 = arith.constant 0 : index
    %c0_0 = arith.constant 0 : index
    %0 = vector.load %arg1[%c0, %c0_0] : memref<16x16xbf16, #tpu.memory_space<vmem>>, vector<16x16xbf16>
    %c0_1 = arith.constant 0 : index
    %c0_2 = arith.constant 0 : index
    %c0_3 = arith.constant 0 : index
    %1 = vector.load %arg2[%c0_1, %c0_2, %c0_3] : memref<2x128x128xbf16, #tpu.memory_space<vmem>>, vector<1x128x128xbf16>
    %2 = vector.shape_cast %1 : vector<1x128x128xbf16> to vector<128x128xbf16>
    %3 = vector.extract_strided_slice %2 {offsets = [0, 0], sizes = [16, 128], strides = [1, 1]} : vector<128x128xbf16> to vector<16x128xbf16>
    %c0_4 = arith.constant 0 : index
    %c0_5 = arith.constant 0 : index
    %4 = vector.load %arg3[%c0_4, %c0_5] : memref<4x128xf32, #tpu.memory_space<vmem>>, vector<1x128xf32>
    %cst = arith.constant dense<0.000000e+00> : vector<16x128xf32>
    %5 = tpu.matmul %0, %3, %cst {dimension_numbers = #tpu.dot_dimension_numbers<[1], [0], [0], [1], [0, 0, 1, 1], [], []>} : vector<16x16xbf16>, vector<16x128xbf16>, vector<16x128xf32> -> vector<16x128xf32>
    %6 = vector.broadcast %4 : vector<1x128xf32> to vector<16x128xf32>
    %7 = arith.addf %5, %6 : vector<16x128xf32>
    %cst_6 = arith.constant 0.000000e+00 : f32
    %8 = vector.broadcast %cst_6 : f32 to vector<16x128xf32>
    %9 = arith.maximumf %7, %8 : vector<16x128xf32>
    %10 = arith.truncf %9 : vector<16x128xf32> to vector<16x128xbf16>
    %c1 = arith.constant 1 : index
    %c0_7 = arith.constant 0 : index
    %c0_8 = arith.constant 0 : index
    %11 = vector.load %arg2[%c1, %c0_7, %c0_8] : memref<2x128x128xbf16, #tpu.memory_space<vmem>>, vector<1x128x128xbf16>
    %12 = vector.shape_cast %11 : vector<1x128x128xbf16> to vector<128x128xbf16>
    %c1_9 = arith.constant 1 : index
    %c0_10 = arith.constant 0 : index
    %13 = vector.load %arg3[%c1_9, %c0_10] : memref<4x128xf32, #tpu.memory_space<vmem>>, vector<1x128xf32>
    %cst_11 = arith.constant dense<0.000000e+00> : vector<16x128xf32>
    %14 = tpu.matmul %10, %12, %cst_11 {dimension_numbers = #tpu.dot_dimension_numbers<[1], [0], [0], [1], [0, 0, 1, 1], [], []>} : vector<16x128xbf16>, vector<128x128xbf16>, vector<16x128xf32> -> vector<16x128xf32>
    %15 = vector.broadcast %13 : vector<1x128xf32> to vector<16x128xf32>
    %16 = arith.addf %14, %15 : vector<16x128xf32>
    %cst_12 = arith.constant 0.000000e+00 : f32
    %17 = vector.broadcast %cst_12 : f32 to vector<16x128xf32>
    %18 = arith.maximumf %16, %17 : vector<16x128xf32>
    %c2 = arith.constant 2 : index
    %c0_13 = arith.constant 0 : index
    %19 = vector.load %arg3[%c2, %c0_13] : memref<4x128xf32, #tpu.memory_space<vmem>>, vector<1x128xf32>
    %c3 = arith.constant 3 : index
    %c0_14 = arith.constant 0 : index
    %20 = vector.load %arg3[%c3, %c0_14] : memref<4x128xf32, #tpu.memory_space<vmem>>, vector<1x128xf32>
    %21 = vector.broadcast %19 : vector<1x128xf32> to vector<16x128xf32>
    %22 = arith.mulf %18, %21 : vector<16x128xf32>
    %23 = vector.broadcast %20 : vector<1x128xf32> to vector<16x128xf32>
    %24 = arith.addf %22, %23 : vector<16x128xf32>
    %c0_15 = arith.constant 0 : index
    %c0_16 = arith.constant 0 : index
    %25 = vector.load %arg4[%c0_15, %c0_16] : memref<16x128xf32, #tpu.memory_space<vmem>>, vector<16x128xf32>
    tpu.vector_store %arg4[%c0_15, %c0_16], %24 {strides = array<i32>} : memref<16x128xf32, #tpu.memory_space<vmem>>, vector<16x128xf32>,
    return
  }
  func.func @transform_0(%arg0: i32) -> (i32, i32) {
    %c0_i32 = arith.constant 0 : i32
    %c0_i32_0 = arith.constant 0 : i32
    return %arg0, %c0_i32 : i32, i32
  }
  func.func @transform_1(%arg0: i32) -> (i32, i32, i32) {
    %c0_i32 = arith.constant 0 : i32
    %c0_i32_0 = arith.constant 0 : i32
    %c0_i32_1 = arith.constant 0 : i32
    %c0_i32_2 = arith.constant 0 : i32
    return %c0_i32, %c0_i32_0, %c0_i32_1 : i32, i32, i32
  }
  func.func @transform_2(%arg0: i32) -> (i32, i32) {
    %c0_i32 = arith.constant 0 : i32
    %c0_i32_0 = arith.constant 0 : i32
    %c0_i32_1 = arith.constant 0 : i32
    return %c0_i32, %c0_i32_0 : i32, i32
  }
  func.func @transform_3(%arg0: i32) -> (i32, i32) {
    %c0_i32 = arith.constant 0 : i32
    %c0_i32_0 = arith.constant 0 : i32
    return %arg0, %c0_i32 : i32, i32
  }
}

</mosaic_0001>

<bundles_post_ra>
// kernel: _forward_impl.1
= control target key start
LH: loop header
LB: loop body
LE: loop exit
PB: predicated region body
PF: predicated region fallthrough
CT: control target
= control target key end

     0   :  { %8 = vsyncpa [#allocation3], 0  ;;  %s508_s0 = inlined_call_operand.vmem [shape: bf16[2,16], index: 0, kind: input, shape index: {}]   ;;  %s509_s1 = inlined_call_operand.hbm [shape: bf16[2,128,128], index: 1, kind: input, shape index: {}]   ;;  %s510_s2 = inlined_call_operand.vmem [shape: f32[4,128], index: 2, kind: input, shape index: {}]   ;;  %s511_s3 = inlined_call_operand.hbm [shape: f32[2,128], index: 3, kind: output, shape index: {}]  }
   0x1   :  { %9 = vsyncpa [#allocation4], 0  ;;  %s419_s12 = smov [#allocation2]   ;;  %s371_s16 = scalar_lea.hbm %s509_s1, 2048 }
   0x2   :  { %s17_s13 = sshll.u32 %s419_s12, 4  ;;  %p372_p0 = scmp.ne.s32.totalorder %s509_s1, %s371_s16  ;;  %s18_s13 = int_to_ptr.vmem [resolvable:$true] %s17_s13 }
   0x3   :  { %p375_p1 = scmp.lt.u32.totalorder %s371_s16, %s509_s1 }
   0x5   :  { %p377_p2 = pnand %p375_p1, %p372_p0 }
   0x7   :  { %380 = shalt.err (!%p377_p2)
}
   0x8   :  { %s381_s21 = scalar_lea.vmem %s18_s13, 2048  ;;  %p386_p4 = scmp.lt.s32.totalorder %s18_s13, %s18_s13 }
   0x9   :  { %p382_p3 = scmp.ne.s32.totalorder %s18_s13, %s381_s21  ;;  %p387_p5 = scmp.lt.s32.totalorder %s381_s21, %s381_s21 }
   0xb   :  { %p388_p6 = por %p387_p5, %p386_p4 }
   0xd   :  { %p389_p7 = pnand %p388_p6, %p382_p3 }
   0xf   :  { %392 = shalt.err (!%p389_p7)
}
  0x10   :  { %s420_s22 = smov 64   ;;  %s421_s23 = smov 4  }
  0x11   :  { %23 = dma.hbm_to_vmem [thread:$0]  %s509_s1, 2048, %s18_s13, [#allocation3], %s420_s22, %s420_s22, %s421_s23  }
  0x12   :  { %415 = dma.done.wait [#allocation3], 2048  }
  0x13   :  { %416 = vsyncadd [#allocation3], 4294965248  ;;  %v60_v0 = vlaneseq  ;;  %v422_v1 = vmov 0.0   ;;  %vm423_vm0 = vmmov 0   ;;  %v424_v2 = vmov 1966171168  }
  0x14   :  { %327 = vmatprep.subr.bf16.mxu0 %v422_v1  ;;  %329 = vmatprep.mubr.msk.bf16.mxu0 %vm423_vm0, %v422_v1  ;;  %v58_v3 = vunpack.c.l.s4 %v424_v2  ;;  %v362_v6 = vld [vmem:[#allocation2] sm:$0xff]   ;;  %v30_v8 = vld [vmem:[%s508_s0] sm:$0x1]  ;;  %v31_v9 = vld [vmem:[%s508_s0 + $0x1] sm:$0x1]  ;;  %vm108_vm1 = vcmask 130048  }
  0x15   :  { %333 = vmatprep.subr.bf16.mxu1 %v422_v1  ;;  %349 = vmatprep.mubr.msk.bf16.mxu1 %vm423_vm0, %v422_v1  ;;  %v61_v5 = vshrl.u32 %v60_v0, 7  ;;  %v32_v10 = vld [vmem:[%s508_s0 + $0x2] sm:$0x1]  ;;  %v33_v11 = vld [vmem:[%s508_s0 + $0x3] sm:$0x1]  ;;  %v53_v14 = vcombine.low %v30_v8, %v31_v9  ;;  %v363_v21 = vld [vmem:[#allocation2 + $0x40] sm:$0xff]  }
  0x16   :  { %v59_v4 = vunpack.c.0.s8 %v58_v3  ;;  %328 = vmatpush3.bf16.msra.mxu0 %v362_v6  ;;  %v34_v12 = vld [vmem:[%s508_s0 + $0x4] sm:$0x1]  ;;  %v35_v13 = vld [vmem:[%s508_s0 + $0x5] sm:$0x1]  ;;  %v36_v15 = vld [vmem:[%s508_s0 + $0x6] sm:$0x1]  ;;  %v54_v17 = vcombine.low %v32_v10, %v33_v11  ;;  %334 = vmatpush3.bf16.msra.mxu1 %v363_v21 }
  0x17   :  { %v37_v16 = vld [vmem:[%s508_s0 + $0x7] sm:$0x1]  ;;  %v55_v18 = vcombine.low %v34_v12, %v35_v13  ;;  %v364_v25 = vld [vmem:[#allocation2 + $0x48] sm:$0xff]   ;;  %335 = vmatprep.subr.bf16.mxu1 %v422_v1  ;;  %v365_v29 = vld [vmem:[#allocation2 + $0x50] sm:$0xff]  }
  0x18   :  { %v62_v7 = vsub.s32 %v59_v4, %v61_v5  ;;  %v56_v19 = vcombine.low %v36_v15, %v37_v16  ;;  %v366_v32 = vld [vmem:[#allocation2 + $0x58] sm:$0xff]   ;;  %v367_v33 = vld [vmem:[#allocation2 + $0x60] sm:$0xff]   ;;  %v368_v34 = vld [vmem:[#allocation2 + $0x68] sm:$0xff]  }
  0x19   :  { %v369_v35 = vld [vmem:[#allocation2 + $0x70] sm:$0xff]   ;;  %v370_v36 = vld [vmem:[#allocation2 + $0x78] sm:$0xff]  }
  0x1a   :  { %v63_v20 = vrot.slane %v53_v14, %v62_v7  ;;  %v70_v22 = vrot.slane %v54_v17, %v62_v7  ;;  %v77_v23 = vrot.slane %v55_v18, %v62_v7  ;;  %v84_v24 = vrot.slane %v56_v19, %v62_v7  ;;  %336 = vmatpush3.bf16.msra.mxu1 %v364_v25  ;;  %v302_v37 = vld [vmem:[%s510_s2] ss:$0 sm:$0xff]  ;;  %v305_v47 = vld [vmem:[%s510_s2 + $0x1] ss:$0 sm:$0xff]  ;;  %v314_v51 = vld [vmem:[%s510_s2 + $0x2] ss:$0 sm:$0xff] }
  0x1b   :  { %337 = vmatprep.subr.bf16.mxu1 %v422_v1  ;;  %v315_v56 = vld [vmem:[%s510_s2 + $0x3] ss:$0 sm:$0xff] }
  0x1c   :  { %v85_v26 = vcombine.low %v63_v20, %v70_v22  ;;  %v86_v27 = vcombine.low %v77_v23, %v84_v24 }
  0x1e   :  { %v93_v28 = vrot.slane %v85_v26, %v62_v7  ;;  %v100_v30 = vrot.slane %v86_v27, %v62_v7  ;;  %338 = vmatpush3.bf16.msra.mxu1 %v365_v29 }
  0x1f   :  { %339 = vmatprep.subr.bf16.mxu1 %v422_v1 }
  0x20   :  { %v101_v31 = vcombine.low %v93_v28, %v100_v30 }
  0x22   :  { %330 = vmatmul.mubr.msk.bf16.vlgmr.msra.gmra.mrb[0].mxu0 %vm108_vm1, %v101_v31  ;;  %340 = vmatpush3.bf16.msra.mxu1 %v366_v32 }
  0x23   :  { %341 = vmatprep.subr.bf16.mxu1 %v422_v1 }
  0x26   :  { %342 = vmatpush3.bf16.msra.mxu1 %v367_v33 }
  0x27   :  { %343 = vmatprep.subr.bf16.mxu1 %v422_v1 }
  0x2a   :  { %344 = vmatpush3.bf16.msra.mxu1 %v368_v34 }
  0x2b   :  { %345 = vmatprep.subr.bf16.mxu1 %v422_v1 }
  0x2e   :  { %346 = vmatpush3.bf16.msra.mxu1 %v369_v35 }
  0x2f   :  { %347 = vmatprep.subr.bf16.mxu1 %v422_v1 }
  0x32   :  { %348 = vmatpush3.bf16.msra.mxu1 %v370_v36 }
  0xf5   :  { %v146_v38 = vpop.f32.mrb[0].mxu0 }
  0xf6   :  { %v147_v39 = vadd.f32 %v302_v37, %v146_v38  ;;  %v331_v40 = vpop.f32.mrb[1].mxu0 }
  0xf7   :  { %v149_v41 = vpop.f32.mrb[2].mxu0 }
  0xf8   :  { %v150_v42 = vadd.f32 %v302_v37, %v149_v41  ;;  %v332_v43 = vpop.f32.mrb[3].mxu0  ;;  %v153_v44 = vmax.f32 %v147_v39, 0.0 }
  0xfa   :  { %v154_v45 = vmax.f32 %v150_v42, 0.0 }
  0xfc   :  { %v155_v46 = vpack.c.bf16 %v154_v45, %v153_v44 }
  0xfe   :  { %350 = vmatmul.mubr.bf16.vlgmr.msra.gmra.mrb[0].mxu1 %v155_v46 }
 0x1d1   :  { %v260_v48 = vpop.f32.mrb[0].mxu1 }
 0x1d2   :  { %v261_v49 = vadd.f32 %v305_v47, %v260_v48  ;;  %v351_v50 = vpop.f32.mrb[1].mxu1 }
 0x1d3   :  { %v263_v52 = vpop.f32.mrb[2].mxu1 }
 0x1d4   :  { %v267_v53 = vmax.f32 %v261_v49, 0.0  ;;  %v264_v54 = vadd.f32 %v305_v47, %v263_v52  ;;  %v352_v55 = vpop.f32.mrb[3].mxu1 }
 0x1d6   :  { %v275_v57 = vmul.f32 %v314_v51, %v267_v53  ;;  %v268_v58 = vmax.f32 %v264_v54, 0.0 }
 0x1d8   :  { %v281_v59 = vadd.f32 %v315_v56, %v275_v57  ;;  %v276_v60 = vmul.f32 %v314_v51, %v268_v58 }
 0x1da   :  { %283 = vst [vmem:[#allocation5] sm:$0xff] %v281_v59  ;;  %v282_v61 = vadd.f32 %v315_v56, %v276_v60 }
 0x1dc   :  { %284 = vst [vmem:[#allocation5 + $0x8] sm:$0xff] %v282_v61 }
 0x1dd   :  { %289 = vsyncadd [#allocation4], 224  ;;  %s425_s21 = smov [#allocation5]  }
 0x1de   :  { %s290_s22 = sshll.u32 %s425_s21, 4  ;;  %s291_s22 = int_to_ptr.vmem [resolvable:$true] %s290_s22 }
 0x1df   :  { %s393_s23 = scalar_lea.vmem %s291_s22, 32  ;;  %s397_s24 = scalar_lea.vmem %s291_s22, 256 }
 0x1e0   :  { %p394_p8 = scmp.ne.s32.totalorder %s291_s22, %s393_s23  ;;  %p398_p9 = scmp.lt.s32.totalorder %s291_s22, %s291_s22 }
 0x1e1   :  { %p399_p10 = scmp.lt.s32.totalorder %s397_s24, %s393_s23 }
 0x1e3   :  { %p400_p11 = por %p399_p10, %p398_p9 }
 0x1e5   :  { %p401_p12 = pnand %p400_p11, %p394_p8 }
 0x1e7   :  { %404 = shalt.err (!%p401_p12)
}
 0x1e8   :  { %s405_s26 = scalar_lea.hbm %s511_s3, 32 }
 0x1e9   :  { %p406_p13 = scmp.ne.s32.totalorder %s511_s3, %s405_s26  ;;  %p409_p0 = scmp.lt.u32.totalorder %s405_s26, %s511_s3 }
 0x1eb   :  { %p411_p1 = pnand %p409_p0, %p406_p13 }
 0x1ed   :  { %414 = shalt.err (!%p411_p1)
}
 0x1ee   :  { %s426_s30 = smov 32   ;;  %s427_s4 = smov 2  }
 0x1ef   :  { %296 = dma.vmem_to_hbm [thread:$0]  %s291_s22, 32, %s511_s3, [#allocation4], %s426_s30, %s426_s30, %s427_s4  }
 0x1f0   :  { %417 = dma.done.wait [#allocation4], 256  }
 0x1f1   :  { %418 = vsyncadd [#allocation4], 4294967040 }
 0x1f2   :  { %300 = vsyncpa [#allocation3], 1 }
 0x1f3   :  { %301 = vsyncpa [#allocation4], 1 }

// kernel: _forward_impl.1
= control target key start
LH: loop header
LB: loop body
LE: loop exit
PB: predicated region body
PF: predicated region fallthrough
CT: control target
= control target key end

     0   :  { %8 = vsyncpa [#allocation3], 0  ;;  %s508_s0 = inlined_call_operand.vmem [shape: bf16[2,16], index: 0, kind: input, shape index: {}]   ;;  %s509_s1 = inlined_call_operand.hbm [shape: bf16[2,128,128], index: 1, kind: input, shape index: {}]   ;;  %s510_s2 = inlined_call_operand.vmem [shape: f32[4,128], index: 2, kind: input, shape index: {}]   ;;  %s511_s3 = inlined_call_operand.hbm [shape: f32[2,128], index: 3, kind: output, shape index: {}]  }
   0x1   :  { %9 = vsyncpa [#allocation4], 0  ;;  %s419_s12 = smov [#allocation2]   ;;  %s371_s16 = scalar_lea.hbm %s509_s1, 2048 }
   0x2   :  { %s17_s13 = sshll.u32 %s419_s12, 4  ;;  %p372_p0 = scmp.ne.s32.totalorder %s509_s1, %s371_s16  ;;  %s18_s13 = int_to_ptr.vmem [resolvable:$true] %s17_s13 }
   0x3   :  { %p375_p1 = scmp.lt.u32.totalorder %s371_s16, %s509_s1 }
   0x5   :  { %p377_p2 = pnand %p375_p1, %p372_p0 }
   0x7   :  { %380 = shalt.err (!%p377_p2)
}
   0x8   :  { %s381_s21 = scalar_lea.vmem %s18_s13, 2048  ;;  %p386_p4 = scmp.lt.s32.totalorder %s18_s13, %s18_s13 }
   0x9   :  { %p382_p3 = scmp.ne.s32.totalorder %s18_s13, %s381_s21  ;;  %p387_p5 = scmp.lt.s32.totalorder %s381_s21, %s381_s21 }
   0xb   :  { %p388_p6 = por %p387_p5, %p386_p4 }
   0xd   :  { %p389_p7 = pnand %p388_p6, %p382_p3 }
   0xf   :  { %392 = shalt.err (!%p389_p7)
}
  0x10   :  { %s420_s22 = smov 64   ;;  %s421_s23 = smov 4  }
  0x11   :  { %23 = dma.hbm_to_vmem [thread:$0]  %s509_s1, 2048, %s18_s13, [#allocation3], %s420_s22, %s420_s22, %s421_s23  }
  0x12   :  { %415 = dma.done.wait [#allocation3], 2048  }
  0x13   :  { %416 = vsyncadd [#allocation3], 4294965248  ;;  %v60_v0 = vlaneseq  ;;  %v422_v1 = vmov 0.0   ;;  %vm423_vm0 = vmmov 0   ;;  %v424_v2 = vmov 1966171168  }
  0x14   :  { %327 = vmatprep.subr.bf16.mxu0 %v422_v1  ;;  %329 = vmatprep.mubr.msk.bf16.mxu0 %vm423_vm0, %v422_v1  ;;  %v58_v3 = vunpack.c.l.s4 %v424_v2  ;;  %v362_v6 = vld [vmem:[#allocation2] sm:$0xff]   ;;  %v30_v8 = vld [vmem:[%s508_s0] sm:$0x1]  ;;  %v31_v9 = vld [vmem:[%s508_s0 + $0x1] sm:$0x1]  ;;  %vm108_vm1 = vcmask 130048  }
  0x15   :  { %333 = vmatprep.subr.bf16.mxu1 %v422_v1  ;;  %349 = vmatprep.mubr.msk.bf16.mxu1 %vm423_vm0, %v422_v1  ;;  %v61_v5 = vshrl.u32 %v60_v0, 7  ;;  %v32_v10 = vld [vmem:[%s508_s0 + $0x2] sm:$0x1]  ;;  %v33_v11 = vld [vmem:[%s508_s0 + $0x3] sm:$0x1]  ;;  %v53_v14 = vcombine.low %v30_v8, %v31_v9  ;;  %v363_v21 = vld [vmem:[#allocation2 + $0x40] sm:$0xff]  }
  0x16   :  { %v59_v4 = vunpack.c.0.s8 %v58_v3  ;;  %328 = vmatpush3.bf16.msra.mxu0 %v362_v6  ;;  %v34_v12 = vld [vmem:[%s508_s0 + $0x4] sm:$0x1]  ;;  %v35_v13 = vld [vmem:[%s508_s0 + $0x5] sm:$0x1]  ;;  %v36_v15 = vld [vmem:[%s508_s0 + $0x6] sm:$0x1]  ;;  %v54_v17 = vcombine.low %v32_v10, %v33_v11  ;;  %334 = vmatpush3.bf16.msra.mxu1 %v363_v21 }
  0x17   :  { %v37_v16 = vld [vmem:[%s508_s0 + $0x7] sm:$0x1]  ;;  %v55_v18 = vcombine.low %v34_v12, %v35_v13  ;;  %v364_v25 = vld [vmem:[#allocation2 + $0x48] sm:$0xff]   ;;  %335 = vmatprep.subr.bf16.mxu1 %v422_v1  ;;  %v365_v29 = vld [vmem:[#allocation2 + $0x50] sm:$0xff]  }
  0x18   :  { %v62_v7 = vsub.s32 %v59_v4, %v61_v5  ;;  %v56_v19 = vcombine.low %v36_v15, %v37_v16  ;;  %v366_v32 = vld [vmem:[#allocation2 + $0x58] sm:$0xff]   ;;  %v367_v33 = vld [vmem:[#allocation2 + $0x60] sm:$0xff]   ;;  %v368_v34 = vld [vmem:[#allocation2 + $0x68] sm:$0xff]  }
  0x19   :  { %v369_v35 = vld [vmem:[#allocation2 + $0x70] sm:$0xff]   ;;  %v370_v36 = vld [vmem:[#allocation2 + $0x78] sm:$0xff]  }
  0x1a   :  { %v63_v20 = vrot.slane %v53_v14, %v62_v7  ;;  %v70_v22 = vrot.slane %v54_v17, %v62_v7  ;;  %v77_v23 = vrot.slane %v55_v18, %v62_v7  ;;  %v84_v24 = vrot.slane %v56_v19, %v62_v7  ;;  %336 = vmatpush3.bf16.msra.mxu1 %v364_v25  ;;  %v302_v37 = vld [vmem:[%s510_s2] ss:$0 sm:$0xff]  ;;  %v305_v47 = vld [vmem:[%s510_s2 + $0x1] ss:$0 sm:$0xff]  ;;  %v314_v51 = vld [vmem:[%s510_s2 + $0x2] ss:$0 sm:$0xff] }
  0x1b   :  { %337 = vmatprep.subr.bf16.mxu1 %v422_v1  ;;  %v315_v56 = vld [vmem:[%s510_s2 + $0x3] ss:$0 sm:$0xff] }
  0x1c   :  { %v85_v26 = vcombine.low %v63_v20, %v70_v22  ;;  %v86_v27 = vcombine.low %v77_v23, %v84_v24 }
  0x1e   :  { %v93_v28 = vrot.slane %v85_v26, %v62_v7  ;;  %v100_v30 = vrot.slane %v86_v27, %v62_v7  ;;  %338 = vmatpush3.bf16.msra.mxu1 %v365_v29 }
  0x1f   :  { %339 = vmatprep.subr.bf16.mxu1 %v422_v1 }
  0x20   :  { %v101_v31 = vcombine.low %v93_v28, %v100_v30 }
  0x22   :  { %330 = vmatmul.mubr.msk.bf16.vlgmr.msra.gmra.mrb[0].mxu0 %vm108_vm1, %v101_v31  ;;  %340 = vmatpush3.bf16.msra.mxu1 %v366_v32 }
  0x23   :  { %341 = vmatprep.subr.bf16.mxu1 %v422_v1 }
  0x26   :  { %342 = vmatpush3.bf16.msra.mxu1 %v367_v33 }
  0x27   :  { %343 = vmatprep.subr.bf16.mxu1 %v422_v1 }
  0x2a   :  { %344 = vmatpush3.bf16.msra.mxu1 %v368_v34 }
  0x2b   :  { %345 = vmatprep.subr.bf16.mxu1 %v422_v1 }
  0x2e   :  { %346 = vmatpush3.bf16.msra.mxu1 %v369_v35 }
  0x2f   :  { %347 = vmatprep.subr.bf16.mxu1 %v422_v1 }
  0x32   :  { %348 = vmatpush3.bf16.msra.mxu1 %v370_v36 }
  0xf5   :  { %v146_v38 = vpop.f32.mrb[0].mxu0 }
  0xf6   :  { %v147_v39 = vadd.f32 %v302_v37, %v146_v38  ;;  %v331_v40 = vpop.f32.mrb[1].mxu0 }
  0xf7   :  { %v149_v41 = vpop.f32.mrb[2].mxu0 }
  0xf8   :  { %v150_v42 = vadd.f32 %v302_v37, %v149_v41  ;;  %v332_v43 = vpop.f32.mrb[3].mxu0  ;;  %v153_v44 = vmax.f32 %v147_v39, 0.0 }
  0xfa   :  { %v154_v45 = vmax.f32 %v150_v42, 0.0 }
  0xfc   :  { %v155_v46 = vpack.c.bf16 %v154_v45, %v153_v44 }
  0xfe   :  { %350 = vmatmul.mubr.bf16.vlgmr.msra.gmra.mrb[0].mxu1 %v155_v46 }
 0x1d1   :  { %v260_v48 = vpop.f32.mrb[0].mxu1 }
 0x1d2   :  { %v261_v49 = vadd.f32 %v305_v47, %v260_v48  ;;  %v351_v50 = vpop.f32.mrb[1].mxu1 }
 0x1d3   :  { %v263_v52 = vpop.f32.mrb[2].mxu1 }
 0x1d4   :  { %v267_v53 = vmax.f32 %v261_v49, 0.0  ;;  %v264_v54 = vadd.f32 %v305_v47, %v263_v52  ;;  %v352_v55 = vpop.f32.mrb[3].mxu1 }
 0x1d6   :  { %v275_v57 = vmul.f32 %v314_v51, %v267_v53  ;;  %v268_v58 = vmax.f32 %v264_v54, 0.0 }
 0x1d8   :  { %v281_v59 = vadd.f32 %v315_v56, %v275_v57  ;;  %v276_v60 = vmul.f32 %v314_v51, %v268_v58 }
 0x1da   :  { %283 = vst [vmem:[#allocation5] sm:$0xff] %v281_v59  ;;  %v282_v61 = vadd.f32 %v315_v56, %v276_v60 }
 0x1dc   :  { %284 = vst [vmem:[#allocation5 + $0x8] sm:$0xff] %v282_v61 }
 0x1dd   :  { %289 = vsyncadd [#allocation4], 224  ;;  %s425_s21 = smov [#allocation5]  }
 0x1de   :  { %s290_s22 = sshll.u32 %s425_s21, 4  ;;  %s291_s22 = int_to_ptr.vmem [resolvable:$true] %s290_s22 }
 0x1df   :  { %s393_s23 = scalar_lea.vmem %s291_s22, 32  ;;  %s397_s24 = scalar_lea.vmem %s291_s22, 256 }
 0x1e0   :  { %p394_p8 = scmp.ne.s32.totalorder %s291_s22, %s393_s23  ;;  %p398_p9 = scmp.lt.s32.totalorder %s291_s22, %s291_s22 }
 0x1e1   :  { %p399_p10 = scmp.lt.s32.totalorder %s397_s24, %s393_s23 }
 0x1e3   :  { %p400_p11 = por %p399_p10, %p398_p9 }
 0x1e5   :  { %p401_p12 = pnand %p400_p11, %p394_p8 }
 0x1e7   :  { %404 = shalt.err (!%p401_p12)
}
 0x1e8   :  { %s405_s26 = scalar_lea.hbm %s511_s3, 32 }
 0x1e9   :  { %p406_p13 = scmp.ne.s32.totalorder %s511_s3, %s405_s26  ;;  %p409_p0 = scmp.lt.u32.totalorder %s405_s26, %s511_s3 }
 0x1eb   :  { %p411_p1 = pnand %p409_p0, %p406_p13 }
 0x1ed   :  { %414 = shalt.err (!%p411_p1)
}
 0x1ee   :  { %s426_s30 = smov 32   ;;  %s427_s4 = smov 2  }
 0x1ef   :  { %296 = dma.vmem_to_hbm [thread:$0]  %s291_s22, 32, %s511_s3, [#allocation4], %s426_s30, %s426_s30, %s427_s4  }
 0x1f0   :  { %417 = dma.done.wait [#allocation4], 256  }
 0x1f1   :  { %418 = vsyncadd [#allocation4], 4294967040 }
 0x1f2   :  { %300 = vsyncpa [#allocation3], 1 }
 0x1f3   :  { %301 = vsyncpa [#allocation4], 1 }

</bundles_post_ra>
